<compile_context>
chip_gen: v6e
topology: v6e:2x2x1
jax: 0.10.0
libtpu: 0.0.40
codegen_flags: <defaults>
</compile_context>

<pallas_src>
import functools

import jax
import jax.numpy as jnp
from jax.experimental import pallas as pl
from jax.experimental.pallas import tpu as pltpu

BN_EPS = 1e-5
_LANE = 128


def _round_up(x, m):
    return (x + m - 1) // m * m


def _pad2(a, rows, cols):
    return jnp.pad(a, ((0, rows - a.shape[0]), (0, cols - a.shape[1])))


# ----------------------------------------------------------------------------
# Fused kernel: whole MLP in one body; activations stay in VMEM / vregs.
# ----------------------------------------------------------------------------
def _fused_mlp_kernel(*refs, num_layers, n_valid, n_padded):
    # refs layout: x, (W,b) * num_layers, (gamma,beta) * (num_layers-1), out
    o_ref = refs[-1]
    x_ref = refs[0]
    lin_refs = refs[1:1 + 2 * num_layers]
    bn_refs = refs[1 + 2 * num_layers:-1]

    inv_n = jnp.float32(1.0 / n_valid)
    n_pad_rows = n_padded - n_valid
    if n_pad_rows:
        row = jax.lax.broadcasted_iota(jnp.int32, (n_padded, 1), 0)
        row_mask = (row < n_valid).astype(jnp.float32)

    h = x_ref[...]  # padded rows are exact zeros (padded in wrapper)
    for layer in range(num_layers - 1):
        w = lin_refs[2 * layer][...]
        b = lin_refs[2 * layer + 1][...]           # f32 (1, H_p)
        gamma = bn_refs[2 * layer][...]
        beta = bn_refs[2 * layer + 1][...]

        # Matmul in storage dtype (f32 or bf16), f32 accumulation.
        y = jnp.dot(h, w, preferred_element_type=jnp.float32) + b

        # Padded rows of h are exactly zero -> padded rows of y equal b exactly,
        # so their contribution to the statistics is corrected with 1xH ops.
        s = jnp.sum(y, axis=0, keepdims=True)
        if n_pad_rows:
            s = s - jnp.float32(n_pad_rows) * b
        mean = s * inv_n

        yc = y - mean                               # two-pass variance (stable)
        ss = jnp.sum(yc * yc, axis=0, keepdims=True)
        if n_pad_rows:
            bc = b - mean
            ss = ss - jnp.float32(n_pad_rows) * (bc * bc)
        var = jnp.maximum(ss * inv_n, 0.0)

        scale = gamma * jax.lax.rsqrt(var + BN_EPS)  # EUP
        h = jnp.maximum(yc * scale + beta, 0.0)      # BN + ReLU, f32
        if n_pad_rows:
            h = h * row_mask                         # keep padded rows at zero
        h = h.astype(w.dtype)                        # back to matmul dtype

    w = lin_refs[2 * (num_layers - 1)][...]
    b = lin_refs[2 * (num_layers - 1) + 1][...]
    y = jnp.dot(h, w, preferred_element_type=jnp.float32) + b
    o_ref[...] = y.astype(o_ref.dtype)


def _full_spec(shape):
    # Block == full (already padded) array; grid=() -> index_map takes no args.
    return pl.BlockSpec(shape, lambda: (0,) * len(shape))


def _vmem_cap_bytes():
    try:
        return int(pltpu.get_tpu_info().vmem_capacity_bytes)
    except Exception:
        return 64 << 20  # conservative (v7x per-TC VMEM)


# ----------------------------------------------------------------------------
# One-time parameter preparation: pad to (x,128) multiples, optional bf16 cast.
# ----------------------------------------------------------------------------
def prepare_mlp_params(params, *, use_bf16=False):
    if params.get("prepared", False):
        return params
    num_layers = params["num_layers"]
    w_dtype = jnp.bfloat16 if use_bf16 else jnp.float32

    linears_p = []
    for w, b in params["linears"]:
        fin, fout = w.shape
        linears_p.append((
            _pad2(w.astype(w_dtype), _round_up(fin, _LANE), _round_up(fout, _LANE)),
            _pad2(b.astype(jnp.float32), 1, _round_up(fout, _LANE)),
        ))
    bns_p = []
    for g, bt in params.get("bn", []):
        hdim = g.shape[1]
        bns_p.append((
            _pad2(g.astype(jnp.float32), 1, _round_up(hdim, _LANE)),
            _pad2(bt.astype(jnp.float32), 1, _round_up(hdim, _LANE)),
        ))
    return {
        "prepared": True,
        "num_layers": num_layers,
        "use_bf16": use_bf16,
        "dout": int(params["linears"][-1][0].shape[1]),
        "linears": tuple(linears_p),
        "bn": tuple(bns_p),
    }


# ----------------------------------------------------------------------------
# Jitted forward: pad x, one pallas_call, slice — all one dispatched program.
# ----------------------------------------------------------------------------
@functools.partial(jax.jit, static_argnames=("num_layers", "use_bf16", "dout"))
def _mlp_forward_impl(x, linears, bns, *, num_layers, use_bf16, dout):
    n, _ = x.shape
    act_dtype = jnp.bfloat16 if use_bf16 else jnp.float32
    sublane = 16 if use_bf16 else 8                 # bf16 vreg tile is (16, 128)
    n_p = _round_up(max(n, sublane), sublane)
    din_p = linears[0][0].shape[0]
    dout_p = linears[-1][0].shape[1]

    x_p = _pad2(x.astype(act_dtype), n_p, din_p)

    inputs = [x_p]
    for w, b in linears:
        inputs.append(w)
        inputs.append(b)
    for g, bt in bns:
        inputs.append(g)
        inputs.append(bt)

    # VMEM budget: parameters + output + a few f32 activation temporaries.
    widths = [din_p] + [w.shape[1] for w, _ in linears]
    param_bytes = sum(int(a.size) * a.dtype.itemsize for a in inputs)
    act_bytes = 4 * n_p * max(widths) * 4           # y, yc, h, misc (f32)
    out_bytes = n_p * dout_p * 4
    est = param_bytes + act_bytes + out_bytes
    vmem_limit = int(min(max(2 * est + (4 << 20), 32 << 20),
                         int(_vmem_cap_bytes() * 0.9)))

    kernel = functools.partial(
        _fused_mlp_kernel, num_layers=num_layers, n_valid=n, n_padded=n_p)

    out_p = pl.pallas_call(
        kernel,
        out_shape=jax.ShapeDtypeStruct((n_p, dout_p), jnp.float32),
        grid=(),
        in_specs=[_full_spec(a.shape) for a in inputs],
        out_specs=_full_spec((n_p, dout_p)),
        compiler_params=pltpu.CompilerParams(vmem_limit_bytes=vmem_limit),
    )(*inputs)

    return out_p[:n, :dout]


def mlp_forward(params, x, *, use_bf16=False):
    prepared = prepare_mlp_params(params, use_bf16=use_bf16)
    return _mlp_forward_impl(
        x, prepared["linears"], prepared["bn"],
        num_layers=prepared["num_layers"],
        use_bf16=prepared["use_bf16"],
        dout=prepared["dout"])


# ----------------------------------------------------------------------------
# Parameter construction (mirrors nn.Linear / BatchNorm1d defaults)
# ----------------------------------------------------------------------------
def init_mlp_params(key, num_layers, input_dim, hidden_dim, output_dim):
    if num_layers < 1:
        raise ValueError("number of layers should be positive!")

    def linear_params(key, fan_in, fan_out):
        kw, kb = jax.random.split(key)
        bound = 1.0 / jnp.sqrt(jnp.float32(fan_in))
        # Stored already transposed: (in, out) so the kernel does x @ W + b.
        w = jax.random.uniform(kw, (fan_in, fan_out), jnp.float32, -bound, bound)
        b = jax.random.uniform(kb, (1, fan_out), jnp.float32, -bound, bound)
        return w, b

    params = {"num_layers": num_layers, "linears": [], "bn": []}
    if num_layers == 1:
        params["linears"].append(linear_params(key, input_dim, output_dim))
        return params

    dims = [input_dim] + [hidden_dim] * (num_layers - 1) + [output_dim]
    keys = jax.random.split(key, num_layers)
    for layer in range(num_layers):
        params["linears"].append(linear_params(keys[layer], dims[layer], dims[layer + 1]))
    for _ in range(num_layers - 1):
        params["bn"].append((jnp.ones((1, hidden_dim), jnp.float32),
                             jnp.zeros((1, hidden_dim), jnp.float32)))
    return params


# ----------------------------------------------------------------------------
# Pure-JAX reference (train-mode BatchNorm1d) for a sanity check
# ----------------------------------------------------------------------------
def mlp_reference(params, x):
    num_layers = params["num_layers"]
    if num_layers == 1:
        w, b = params["linears"][0]
        return x @ w + b
    h = x
    for layer in range(num_layers - 1):
        w, b = params["linears"][layer]
        gamma, beta = params["bn"][layer]
        y = h @ w + b
        mean = jnp.mean(y, axis=0, keepdims=True)
        var = jnp.mean((y - mean) ** 2, axis=0, keepdims=True)
        y = (y - mean) / jnp.sqrt(var + BN_EPS) * gamma + beta
        h = jnp.maximum(y, 0.0)
    w, b = params["linears"][num_layers - 1]
    return h @ w + b


if __name__ == "__main__":
    key = jax.random.PRNGKey(0)

    # --- 3-layer MLP, batch not a multiple of 8 (exercises the BN padded-row fixup) ---
    num_layers, input_dim, hidden_dim, output_dim = 3, 16, 32, 8
    batch = 6
    k_params, k_x, k_rest = jax.random.split(key, 3)
    params = init_mlp_params(k_params, num_layers, input_dim, hidden_dim, output_dim)
    x = jax.random.normal(k_x, (batch, input_dim), jnp.float32)

    prepared = prepare_mlp_params(params)   # pad once, reuse across forwards
    out = jax.block_until_ready(mlp_forward(prepared, x))
    ref = mlp_reference(params, x)
    assert out.shape == (batch, output_dim)
    assert jnp.allclose(out, ref, atol=1e-3, rtol=1e-3), "3-layer mismatch vs reference"

    # --- 1-layer (pure linear) path ---
    k_p1, k_x1, k_xb = jax.random.split(k_rest, 3)
    params1 = init_mlp_params(k_p1, 1, input_dim, hidden_dim, output_dim)
    x1 = jax.random.normal(k_x1, (batch, input_dim), jnp.float32)
    out1 = jax.block_until_ready(mlp_forward(params1, x1))
    ref1 = mlp_reference(params1, x1)
    assert out1.shape == (batch, output_dim)
    assert jnp.allclose(out1, ref1, atol=1e-3, rtol=1e-3), "1-layer mismatch vs reference"

    # --- bf16 storage / MXU path (f32 accumulation + f32 BN epilogue) ---
    prepared_bf16 = prepare_mlp_params(params, use_bf16=True)
    xb = jax.random.normal(k_xb, (12, input_dim), jnp.float32)
    outb = jax.block_until_ready(mlp_forward(prepared_bf16, xb, use_bf16=True))
    assert outb.shape == (12, output_dim)
    assert bool(jnp.all(jnp.isfinite(outb)))

    print("KERNEL_OK")
</pallas_src>

<mosaic_0001>
module attributes {stable_mosaic.version = 11 : i64} {
  func.func @_fused_mlp_kernel(%arg0: memref<8x128xf32, #tpu.memory_space<vmem>>, %arg1: memref<128x128xf32, #tpu.memory_space<vmem>>, %arg2: memref<1x128xf32, #tpu.memory_space<vmem>>, %arg3: memref<128x128xf32, #tpu.memory_space<vmem>>, %arg4: memref<1x128xf32, #tpu.memory_space<vmem>>, %arg5: memref<128x128xf32, #tpu.memory_space<vmem>>, %arg6: memref<1x128xf32, #tpu.memory_space<vmem>>, %arg7: memref<1x128xf32, #tpu.memory_space<vmem>>, %arg8: memref<1x128xf32, #tpu.memory_space<vmem>>, %arg9: memref<1x128xf32, #tpu.memory_space<vmem>>, %arg10: memref<1x128xf32, #tpu.memory_space<vmem>>, %arg11: memref<8x128xf32, #tpu.memory_space<vmem>>) attributes {dimension_semantics = [], scalar_prefetch = 0 : i64, scratch_operands = 0 : i64, tpu.core_type = #tpu.core_type<tc>} {
    %0 = tpu.iota {dimensions = array<i32: 0>} : vector<8x1xi32>
    %c6_i32 = arith.constant 6 : i32
    %1 = vector.broadcast %c6_i32 : i32 to vector<8x1xi32>
    %2 = arith.cmpi slt, %0, %1 : vector<8x1xi32>
    %3 = arith.extui %2 : vector<8x1xi1> to vector<8x1xi32>
    %4 = arith.sitofp %3 : vector<8x1xi32> to vector<8x1xf32>
    %c0 = arith.constant 0 : index
    %c0_0 = arith.constant 0 : index
    %5 = vector.load %arg0[%c0, %c0_0] : memref<8x128xf32, #tpu.memory_space<vmem>>, vector<8x128xf32>
    %c0_1 = arith.constant 0 : index
    %c0_2 = arith.constant 0 : index
    %6 = vector.load %arg1[%c0_1, %c0_2] : memref<128x128xf32, #tpu.memory_space<vmem>>, vector<128x128xf32>
    %c0_3 = arith.constant 0 : index
    %c0_4 = arith.constant 0 : index
    %7 = vector.load %arg2[%c0_3, %c0_4] : memref<1x128xf32, #tpu.memory_space<vmem>>, vector<1x128xf32>
    %c0_5 = arith.constant 0 : index
    %c0_6 = arith.constant 0 : index
    %8 = vector.load %arg7[%c0_5, %c0_6] : memref<1x128xf32, #tpu.memory_space<vmem>>, vector<1x128xf32>
    %c0_7 = arith.constant 0 : index
    %c0_8 = arith.constant 0 : index
    %9 = vector.load %arg8[%c0_7, %c0_8] : memref<1x128xf32, #tpu.memory_space<vmem>>, vector<1x128xf32>
    %cst = arith.constant dense<0.000000e+00> : vector<8x128xf32>
    %10 = tpu.matmul %5, %6, %cst {dimension_numbers = #tpu.dot_dimension_numbers<[1], [0], [0], [1], [0, 0, 1, 1], [], []>} : vector<8x128xf32>, vector<128x128xf32>, vector<8x128xf32> -> vector<8x128xf32>
    %11 = vector.broadcast %7 : vector<1x128xf32> to vector<8x128xf32>
    %12 = arith.addf %10, %11 : vector<8x128xf32>
    %cst_9 = arith.constant dense<0.000000e+00> : vector<128xf32>
    %13 = vector.multi_reduction <add>, %12, %cst_9 [0] : vector<8x128xf32> to vector<128xf32>
    %14 = vector.shape_cast %13 : vector<128xf32> to vector<1x128xf32>
    %cst_10 = arith.constant 2.000000e+00 : f32
    %15 = vector.broadcast %cst_10 : f32 to vector<1x128xf32>
    %16 = arith.mulf %15, %7 : vector<1x128xf32>
    %17 = arith.subf %14, %16 : vector<1x128xf32>
    %cst_11 = arith.constant 0.166666672 : f32
    %18 = vector.broadcast %cst_11 : f32 to vector<1x128xf32>
    %19 = arith.mulf %17, %18 : vector<1x128xf32>
    %20 = vector.broadcast %19 : vector<1x128xf32> to vector<8x128xf32>
    %21 = arith.subf %12, %20 : vector<8x128xf32>
    %22 = arith.mulf %21, %21 : vector<8x128xf32>
    %cst_12 = arith.constant dense<0.000000e+00> : vector<128xf32>
    %23 = vector.multi_reduction <add>, %22, %cst_12 [0] : vector<8x128xf32> to vector<128xf32>
    %24 = vector.shape_cast %23 : vector<128xf32> to vector<1x128xf32>
    %25 = arith.subf %7, %19 : vector<1x128xf32>
    %26 = arith.mulf %25, %25 : vector<1x128xf32>
    %cst_13 = arith.constant 2.000000e+00 : f32
    %27 = vector.broadcast %cst_13 : f32 to vector<1x128xf32>
    %28 = arith.mulf %27, %26 : vector<1x128xf32>
    %29 = arith.subf %24, %28 : vector<1x128xf32>
    %cst_14 = arith.constant 0.166666672 : f32
    %30 = vector.broadcast %cst_14 : f32 to vector<1x128xf32>
    %31 = arith.mulf %29, %30 : vector<1x128xf32>
    %cst_15 = arith.constant 0.000000e+00 : f32
    %32 = vector.broadcast %cst_15 : f32 to vector<1x128xf32>
    %33 = arith.maximumf %31, %32 : vector<1x128xf32>
    %cst_16 = arith.constant 9.99999974E-6 : f32
    %34 = vector.broadcast %cst_16 : f32 to vector<1x128xf32>
    %35 = arith.addf %33, %34 : vector<1x128xf32>
    %36 = math.rsqrt %35 : vector<1x128xf32>
    %37 = arith.mulf %8, %36 : vector<1x128xf32>
    %38 = vector.broadcast %37 : vector<1x128xf32> to vector<8x128xf32>
    %39 = arith.mulf %21, %38 : vector<8x128xf32>
    %40 = vector.broadcast %9 : vector<1x128xf32> to vector<8x128xf32>
    %41 = arith.addf %39, %40 : vector<8x128xf32>
    %cst_17 = arith.constant 0.000000e+00 : f32
    %42 = vector.broadcast %cst_17 : f32 to vector<8x128xf32>
    %43 = arith.maximumf %41, %42 : vector<8x128xf32>
    %44 = vector.broadcast %4 : vector<8x1xf32> to vector<8x128xf32>
    %45 = arith.mulf %43, %44 : vector<8x128xf32>
    %c0_18 = arith.constant 0 : index
    %c0_19 = arith.constant 0 : index
    %46 = vector.load %arg3[%c0_18, %c0_19] : memref<128x128xf32, #tpu.memory_space<vmem>>, vector<128x128xf32>
    %c0_20 = arith.constant 0 : index
    %c0_21 = arith.constant 0 : index
    %47 = vector.load %arg4[%c0_20, %c0_21] : memref<1x128xf32, #tpu.memory_space<vmem>>, vector<1x128xf32>
    %c0_22 = arith.constant 0 : index
    %c0_23 = arith.constant 0 : index
    %48 = vector.load %arg9[%c0_22, %c0_23] : memref<1x128xf32, #tpu.memory_space<vmem>>, vector<1x128xf32>
    %c0_24 = arith.constant 0 : index
    %c0_25 = arith.constant 0 : index
    %49 = vector.load %arg10[%c0_24, %c0_25] : memref<1x128xf32, #tpu.memory_space<vmem>>, vector<1x128xf32>
    %cst_26 = arith.constant dense<0.000000e+00> : vector<8x128xf32>
    %50 = tpu.matmul %45, %46, %cst_26 {dimension_numbers = #tpu.dot_dimension_numbers<[1], [0], [0], [1], [0, 0, 1, 1], [], []>} : vector<8x128xf32>, vector<128x128xf32>, vector<8x128xf32> -> vector<8x128xf32>
    %51 = vector.broadcast %47 : vector<1x128xf32> to vector<8x128xf32>
    %52 = arith.addf %50, %51 : vector<8x128xf32>
    %cst_27 = arith.constant dense<0.000000e+00> : vector<128xf32>
    %53 = vector.multi_reduction <add>, %52, %cst_27 [0] : vector<8x128xf32> to vector<128xf32>
    %54 = vector.shape_cast %53 : vector<128xf32> to vector<1x128xf32>
    %cst_28 = arith.constant 2.000000e+00 : f32
    %55 = vector.broadcast %cst_28 : f32 to vector<1x128xf32>
    %56 = arith.mulf %55, %47 : vector<1x128xf32>
    %57 = arith.subf %54, %56 : vector<1x128xf32>
    %cst_29 = arith.constant 0.166666672 : f32
    %58 = vector.broadcast %cst_29 : f32 to vector<1x128xf32>
    %59 = arith.mulf %57, %58 : vector<1x128xf32>
    %60 = vector.broadcast %59 : vector<1x128xf32> to vector<8x128xf32>
    %61 = arith.subf %52, %60 : vector<8x128xf32>
    %62 = arith.mulf %61, %61 : vector<8x128xf32>
    %cst_30 = arith.constant dense<0.000000e+00> : vector<128xf32>
    %63 = vector.multi_reduction <add>, %62, %cst_30 [0] : vector<8x128xf32> to vector<128xf32>
    %64 = vector.shape_cast %63 : vector<128xf32> to vector<1x128xf32>
    %65 = arith.subf %47, %59 : vector<1x128xf32>
    %66 = arith.mulf %65, %65 : vector<1x128xf32>
    %cst_31 = arith.constant 2.000000e+00 : f32
    %67 = vector.broadcast %cst_31 : f32 to vector<1x128xf32>
    %68 = arith.mulf %67, %66 : vector<1x128xf32>
    %69 = arith.subf %64, %68 : vector<1x128xf32>
    %cst_32 = arith.constant 0.166666672 : f32
    %70 = vector.broadcast %cst_32 : f32 to vector<1x128xf32>
    %71 = arith.mulf %69, %70 : vector<1x128xf32>
    %cst_33 = arith.constant 0.000000e+00 : f32
    %72 = vector.broadcast %cst_33 : f32 to vector<1x128xf32>
    %73 = arith.maximumf %71, %72 : vector<1x128xf32>
    %cst_34 = arith.constant 9.99999974E-6 : f32
    %74 = vector.broadcast %cst_34 : f32 to vector<1x128xf32>
    %75 = arith.addf %73, %74 : vector<1x128xf32>
    %76 = math.rsqrt %75 : vector<1x128xf32>
    %77 = arith.mulf %48, %76 : vector<1x128xf32>
    %78 = vector.broadcast %77 : vector<1x128xf32> to vector<8x128xf32>
    %79 = arith.mulf %61, %78 : vector<8x128xf32>
    %80 = vector.broadcast %49 : vector<1x128xf32> to vector<8x128xf32>
    %81 = arith.addf %79, %80 : vector<8x128xf32>
    %cst_35 = arith.constant 0.000000e+00 : f32
    %82 = vector.broadcast %cst_35 : f32 to vector<8x128xf32>
    %83 = arith.maximumf %81, %82 : vector<8x128xf32>
    %84 = vector.broadcast %4 : vector<8x1xf32> to vector<8x128xf32>
    %85 = arith.mulf %83, %84 : vector<8x128xf32>
    %c0_36 = arith.constant 0 : index
    %c0_37 = arith.constant 0 : index
    %86 = vector.load %arg5[%c0_36, %c0_37] : memref<128x128xf32, #tpu.memory_space<vmem>>, vector<128x128xf32>
    %c0_38 = arith.constant 0 : index
    %c0_39 = arith.constant 0 : index
    %87 = vector.load %arg6[%c0_38, %c0_39] : memref<1x128xf32, #tpu.memory_space<vmem>>, vector<1x128xf32>
    %cst_40 = arith.constant dense<0.000000e+00> : vector<8x128xf32>
    %88 = tpu.matmul %85, %86, %cst_40 {dimension_numbers = #tpu.dot_dimension_numbers<[1], [0], [0], [1], [0, 0, 1, 1], [], []>} : vector<8x128xf32>, vector<128x128xf32>, vector<8x128xf32> -> vector<8x128xf32>
    %89 = vector.broadcast %87 : vector<1x128xf32> to vector<8x128xf32>
    %90 = arith.addf %88, %89 : vector<8x128xf32>
    %c0_41 = arith.constant 0 : index
    %c0_42 = arith.constant 0 : index
    %91 = vector.load %arg11[%c0_41, %c0_42] : memref<8x128xf32, #tpu.memory_space<vmem>>, vector<8x128xf32>
    tpu.vector_store %arg11[%c0_41, %c0_42], %90 {strides = array<i32>} : memref<8x128xf32, #tpu.memory_space<vmem>>, vector<8x128xf32>,
    return
  }
}

</mosaic_0001>

<bundles_post_ra>
// kernel: _mlp_forward_impl.1
= control target key start
LH: loop header
LB: loop body
LE: loop exit
PB: predicated region body
PF: predicated region fallthrough
CT: control target
= control target key end

     0   :  { %16 = vsyncpa [#allocation3], 0  ;;  %s907_s0 = inlined_call_operand.vmem [shape: f32[8,128], index: 0, kind: input, shape index: {}]   ;;  %s908_s1 = inlined_call_operand.hbm [shape: f32[128,128], index: 1, kind: input, shape index: {}]   ;;  %s909_s2 = inlined_call_operand.vmem [shape: f32[1,128], index: 2, kind: input, shape index: {}]   ;;  %s910_s3 = inlined_call_operand.hbm [shape: f32[128,128], index: 3, kind: input, shape index: {}]   ;;  %s911_s4 = inlined_call_operand.vmem [shape: f32[1,128], index: 4, kind: input, shape index: {}]   ;;  %s912_s5 = inlined_call_operand.hbm [shape: f32[128,128], index: 5, kind: input, shape index: {}]   ;;  %s913_s6 = inlined_call_operand.vmem [shape: f32[1,128], index: 6, kind: input, shape index: {}]   ;;  %s914_s7 = inlined_call_operand.vmem [shape: f32[1,128], index: 7, kind: input, shape index: {}]   ;;  %s915_s8 = inlined_call_operand.vmem [shape: f32[1,128], index: 8, kind: input, shape index: {}]   ;;  %s916_s9 = inlined_call_operand.vmem [shape: f32[1,128], index: 9, kind: input, shape index: {}]   ;;  %s917_s10 = inlined_call_operand.vmem [shape: f32[1,128], index: 10, kind: input, shape index: {}]   ;;  %s918_s11 = inlined_call_operand.hbm [shape: f32[8,128], index: 11, kind: output, shape index: {}]  }
   0x1   :  { %17 = vsyncpa [#allocation6], 0 }
   0x2   :  { %18 = vsyncpa [#allocation4], 0  ;;  %s736_s17 = smov [#allocation5]   ;;  %s737_s19 = smov [#allocation2]  }
   0x3   :  { %s40_s18 = sshll.u32 %s736_s17, 4  ;;  %s26_s20 = sshll.u32 %s737_s19, 4  ;;  %s41_s18 = int_to_ptr.vmem [resolvable:$true] %s40_s18  ;;  %s27_s20 = int_to_ptr.vmem [resolvable:$true] %s26_s20 }
   0x4   :  { %s658_s21 = scalar_lea.vmem %s41_s18, 2048  ;;  %p663_p1 = scmp.lt.s32.totalorder %s41_s18, %s41_s18 }
   0x5   :  { %p659_p0 = scmp.ne.s32.totalorder %s41_s18, %s658_s21  ;;  %p664_p2 = scmp.lt.s32.totalorder %s658_s21, %s658_s21 }
   0x7   :  { %p665_p3 = por %p664_p2, %p663_p1 }
   0x9   :  { %p666_p4 = pnand %p665_p3, %p659_p0 }
   0xb   :  { %669 = shalt.err (!%p666_p4)
}
   0xc   :  { %s738_s22 = smov 128   ;;  %s739_s23 = smov 8  }
   0xd   :  { %46 = dma.hbm_to_vmem [thread:$0]  %s910_s3, 2048, %s41_s18, [#allocation6], %s738_s22, %s738_s22, %s739_s23  }
   0xe   :  { %s678_s26 = scalar_lea.vmem %s27_s20, 2048  ;;  %p683_p6 = scmp.lt.s32.totalorder %s27_s20, %s27_s20 }
   0xf   :  { %p679_p5 = scmp.ne.s32.totalorder %s27_s20, %s678_s26  ;;  %p684_p7 = scmp.lt.s32.totalorder %s678_s26, %s678_s26 }
  0x11   :  { %p685_p8 = por %p684_p7, %p683_p6 }
  0x13   :  { %p686_p9 = pnand %p685_p8, %p679_p5 }
  0x15   :  { %689 = shalt.err (!%p686_p9)
}
  0x16   :  { %32 = dma.hbm_to_vmem [thread:$0]  %s908_s1, 2048, %s27_s20, [#allocation3], %s738_s22, %s738_s22, %s739_s23  }
  0x17   :  { %s740_s29 = smov [#allocation7]  }
  0x18   :  { %s54_s30 = sshll.u32 %s740_s29, 4  ;;  %s55_s30 = int_to_ptr.vmem [resolvable:$true] %s54_s30 }
  0x19   :  { %s698_s12 = scalar_lea.vmem %s55_s30, 2048  ;;  %p703_p11 = scmp.lt.s32.totalorder %s55_s30, %s55_s30 }
  0x1a   :  { %p699_p10 = scmp.ne.s32.totalorder %s55_s30, %s698_s12  ;;  %p704_p12 = scmp.lt.s32.totalorder %s698_s12, %s698_s12 }
  0x1c   :  { %p705_p13 = por %p704_p12, %p703_p11 }
  0x1e   :  { %p706_p0 = pnand %p705_p13, %p699_p10 }
  0x20   :  { %709 = shalt.err (!%p706_p0)
}
  0x21   :  { %60 = dma.hbm_to_vmem [thread:$0]  %s912_s5, 2048, %s55_s30, [#allocation6], %s738_s22, %s738_s22, %s739_s23  }
  0x22   :  { %730 = dma.done.wait [#allocation3], 2048  }
  0x23   :  { %731 = vsyncadd [#allocation3], 4294965248 }
  0x24   :  { %732 = dma.done.wait [#allocation6], 4096  }
  0x25   :  { %733 = vsyncadd [#allocation6], 4294963200  ;;  %v741_v0 = vmov 0.0   ;;  %vm742_vm0 = vmmov 0   ;;  %v101_v1 = vld [vmem:[#allocation2 + $0x78] sm:$0xff]  ;;  %v100_v2 = vld [vmem:[#allocation2 + $0x70] sm:$0xff]  ;;  %v80_v34 = vlaneseq }
  0x26   :  { %533 = vmatprep.subr.mxu0 %v741_v0  ;;  %565 = vmatprep.mubr.msk.f32.mxu0 %vm742_vm0, %v741_v0  ;;  %v99_v3 = vld [vmem:[#allocation2 + $0x68] sm:$0xff]  ;;  %v98_v4 = vld [vmem:[#allocation2 + $0x60] sm:$0xff]  ;;  %v97_v5 = vld [vmem:[#allocation2 + $0x58] sm:$0xff]  ;;  %s743_s23 = smov [#allocation8]  }
  0x27   :  { %568 = vmatprep.subr.mxu1 %v741_v0  ;;  %600 = vmatprep.mubr.msk.f32.mxu1 %vm742_vm0, %v741_v0  ;;  %v96_v6 = vld [vmem:[#allocation2 + $0x50] sm:$0xff]  ;;  %v95_v7 = vld [vmem:[#allocation2 + $0x48] sm:$0xff]  ;;  %v94_v8 = vld [vmem:[#allocation2 + $0x40] sm:$0xff]  ;;  %v81_v35 = vshrl.u32 %v80_v34, 7 }
  0x28   :  { %534 = vmatpush3.msra.mxu0 %v101_v1  ;;  %v93_v9 = vld [vmem:[#allocation2 + $0x38] sm:$0xff]  ;;  %v92_v10 = vld [vmem:[#allocation2 + $0x30] sm:$0xff]  ;;  %v91_v11 = vld [vmem:[#allocation2 + $0x28] sm:$0xff] }
  0x29   :  { %535 = vmatprep.subr.mxu0 %v741_v0  ;;  %v90_v12 = vld [vmem:[#allocation2 + $0x20] sm:$0xff]  ;;  %v89_v13 = vld [vmem:[#allocation2 + $0x18] sm:$0xff]  ;;  %v88_v14 = vld [vmem:[#allocation2 + $0x10] sm:$0xff]  ;;  %v855_v36 = vsub.s32 0, %v81_v35  ;;  %vm82_vm1 = vcmp.lt.s32.totalorder %v81_v35, 6 }
  0x2a   :  { %536 = vmatpush3.msra.mxu0 %v100_v2  ;;  %v87_v15 = vld [vmem:[#allocation2 + $0x8] sm:$0xff]  ;;  %v86_v16 = vld [vmem:[#allocation2] sm:$0xff]  ;;  %v242_v18 = vld [vmem:[#allocation5 + $0x78] sm:$0xff] }
  0x2b   :  { %537 = vmatprep.subr.mxu0 %v741_v0  ;;  %v85_v17 = vld [vmem:[%s907_s0] sm:$0xff]  ;;  %569 = vmatpush3.msra.mxu1 %v242_v18  ;;  %v241_v19 = vld [vmem:[#allocation5 + $0x70] sm:$0xff]  ;;  %v240_v20 = vld [vmem:[#allocation5 + $0x68] sm:$0xff] }
  0x2c   :  { %538 = vmatpush3.msra.mxu0 %v99_v3  ;;  %570 = vmatprep.subr.mxu1 %v741_v0  ;;  %v239_v21 = vld [vmem:[#allocation5 + $0x60] sm:$0xff]  ;;  %v238_v22 = vld [vmem:[#allocation5 + $0x58] sm:$0xff]  ;;  %v237_v23 = vld [vmem:[#allocation5 + $0x50] sm:$0xff] }
  0x2d   :  { %539 = vmatprep.subr.mxu0 %v741_v0  ;;  %571 = vmatpush3.msra.mxu1 %v241_v19  ;;  %v236_v24 = vld [vmem:[#allocation5 + $0x48] sm:$0xff]  ;;  %v235_v25 = vld [vmem:[#allocation5 + $0x40] sm:$0xff]  ;;  %v234_v26 = vld [vmem:[#allocation5 + $0x38] sm:$0xff] }
  0x2e   :  { %540 = vmatpush3.msra.mxu0 %v98_v4  ;;  %572 = vmatprep.subr.mxu1 %v741_v0  ;;  %v233_v27 = vld [vmem:[#allocation5 + $0x30] sm:$0xff]  ;;  %v232_v28 = vld [vmem:[#allocation5 + $0x28] sm:$0xff]  ;;  %v231_v29 = vld [vmem:[#allocation5 + $0x20] sm:$0xff] }
  0x2f   :  { %541 = vmatprep.subr.mxu0 %v741_v0  ;;  %573 = vmatpush3.msra.mxu1 %v240_v20  ;;  %v230_v30 = vld [vmem:[#allocation5 + $0x18] sm:$0xff]  ;;  %v229_v31 = vld [vmem:[#allocation5 + $0x10] sm:$0xff]  ;;  %v228_v32 = vld [vmem:[#allocation5 + $0x8] sm:$0xff] }
  0x30   :  { %542 = vmatpush3.msra.mxu0 %v97_v5  ;;  %574 = vmatprep.subr.mxu1 %v741_v0  ;;  %v227_v33 = vld [vmem:[#allocation5] sm:$0xff]  ;;  %v379_v18 = vld [vmem:[#allocation7 + $0x58] sm:$0xff]  ;;  %v378_v19 = vld [vmem:[#allocation7 + $0x50] sm:$0xff] }
  0x31   :  { %543 = vmatprep.subr.mxu0 %v741_v0  ;;  %575 = vmatpush3.msra.mxu1 %v239_v21  ;;  %v102_v37 = vld [vmem:[%s909_s2] sm:$0x1]  ;;  %v377_v20 = vld [vmem:[#allocation7 + $0x48] sm:$0xff] }
  0x32   :  { %544 = vmatpush3.msra.mxu0 %v96_v6  ;;  %576 = vmatprep.subr.mxu1 %v741_v0  ;;  %v109_v38 = vrot.slane %v102_v37, %v855_v36  ;;  %v187_v47 = vmul.f32 2.0, %v102_v37  ;;  %v103_v4 = vld [vmem:[%s914_s7] sm:$0x1] }
  0x33   :  { %545 = vmatprep.subr.mxu0 %v741_v0  ;;  %577 = vmatpush3.msra.mxu1 %v238_v22  ;;  %v376_v21 = vld [vmem:[#allocation7 + $0x40] sm:$0xff]  ;;  %v375_v22 = vld [vmem:[#allocation7 + $0x38] sm:$0xff] }
  0x34   :  { %546 = vmatpush3.msra.mxu0 %v95_v7  ;;  %578 = vmatprep.subr.mxu1 %v741_v0 }
  0x35   :  { %547 = vmatprep.subr.mxu0 %v741_v0  ;;  %579 = vmatpush3.msra.mxu1 %v237_v23  ;;  %v374_v23 = vld [vmem:[#allocation7 + $0x30] sm:$0xff] }
  0x36   :  { %548 = vmatpush3.msra.mxu0 %v94_v8  ;;  %580 = vmatprep.subr.mxu1 %v741_v0  ;;  %v479_v8 = vld [vmem:[%s915_s8] ss:$0 sm:$0xff] }
  0x37   :  { %549 = vmatprep.subr.mxu0 %v741_v0  ;;  %581 = vmatpush3.msra.mxu1 %v236_v24  ;;  %v373_v24 = vld [vmem:[#allocation7 + $0x28] sm:$0xff] }
  0x38   :  { %550 = vmatpush3.msra.mxu0 %v93_v9  ;;  %582 = vmatprep.subr.mxu1 %v741_v0 }
  0x39   :  { %551 = vmatprep.subr.mxu0 %v741_v0  ;;  %583 = vmatpush3.msra.mxu1 %v235_v25  ;;  %v372_v25 = vld [vmem:[#allocation7 + $0x20] sm:$0xff] }
  0x3a   :  { %552 = vmatpush3.msra.mxu0 %v92_v10  ;;  %584 = vmatprep.subr.mxu1 %v741_v0 }
  0x3b   :  { %553 = vmatprep.subr.mxu0 %v741_v0  ;;  %585 = vmatpush3.msra.mxu1 %v234_v26  ;;  %v371_v26 = vld [vmem:[#allocation7 + $0x18] sm:$0xff] }
  0x3c   :  { %554 = vmatpush3.msra.mxu0 %v91_v11  ;;  %586 = vmatprep.subr.mxu1 %v741_v0  ;;  %v870_v11 = vsel %vm82_vm1, 1.0, %v741_v0 }
  0x3d   :  { %555 = vmatprep.subr.mxu0 %v741_v0  ;;  %587 = vmatpush3.msra.mxu1 %v233_v27  ;;  %v370_v27 = vld [vmem:[#allocation7 + $0x10] sm:$0xff] }
  0x3e   :  { %556 = vmatpush3.msra.mxu0 %v90_v12  ;;  %588 = vmatprep.subr.mxu1 %v741_v0 }
  0x3f   :  { %557 = vmatprep.subr.mxu0 %v741_v0  ;;  %589 = vmatpush3.msra.mxu1 %v232_v28  ;;  %v369_v28 = vld [vmem:[#allocation7 + $0x8] sm:$0xff] }
  0x40   :  { %558 = vmatpush3.msra.mxu0 %v89_v13  ;;  %590 = vmatprep.subr.mxu1 %v741_v0 }
  0x41   :  { %559 = vmatprep.subr.mxu0 %v741_v0  ;;  %591 = vmatpush3.msra.mxu1 %v231_v29  ;;  %v368_v29 = vld [vmem:[#allocation7] sm:$0xff] }
  0x42   :  { %560 = vmatpush3.msra.mxu0 %v88_v14  ;;  %592 = vmatprep.subr.mxu1 %v741_v0  ;;  %v383_v14 = vld [vmem:[#allocation7 + $0x78] sm:$0xff] }
  0x43   :  { %561 = vmatprep.subr.mxu0 %v741_v0  ;;  %593 = vmatpush3.msra.mxu1 %v230_v30  ;;  %v243_v30 = vld [vmem:[%s911_s4] sm:$0x1] }
  0x44   :  { %562 = vmatpush3.msra.mxu0 %v87_v15  ;;  %594 = vmatprep.subr.mxu1 %v741_v0  ;;  %v382_v15 = vld [vmem:[#allocation7 + $0x70] sm:$0xff] }
  0x45   :  { %563 = vmatprep.subr.mxu0 %v741_v0  ;;  %595 = vmatpush3.msra.mxu1 %v229_v31  ;;  %v250_v31 = vrot.slane %v243_v30, %v855_v36 }
  0x46   :  { %564 = vmatpush3.msra.mxu0 %v86_v16  ;;  %596 = vmatprep.subr.mxu1 %v741_v0  ;;  %v381_v16 = vld [vmem:[#allocation7 + $0x68] sm:$0xff] }
  0x47   :  { %566 = vmatmul.mubr.f32.vlgmr.msra.gmra.mxu0 %v85_v17  ;;  %603 = vmatprep.subr.mxu0 %v741_v0  ;;  %v380_v17 = vld [vmem:[#allocation7 + $0x60] sm:$0xff] }
  0x48   :  { %635 = vmatprep.mubr.msk.f32.mxu0 %vm742_vm0, %v741_v0  ;;  %597 = vmatpush3.msra.mxu1 %v228_v32 }
  0x49   :  { %598 = vmatprep.subr.mxu1 %v741_v0  ;;  %604 = vmatpush3.msra.mxu0 %v383_v14 }
  0x4a   :  { %599 = vmatpush3.msra.mxu1 %v227_v33  ;;  %605 = vmatprep.subr.mxu0 %v741_v0 }
  0x4b   :  { %606 = vmatpush3.msra.mxu0 %v382_v15 }
  0x4c   :  { %607 = vmatprep.subr.mxu0 %v741_v0 }
  0x4d   :  { %608 = vmatpush3.msra.mxu0 %v381_v16 }
  0x4e   :  { %609 = vmatprep.subr.mxu0 %v741_v0 }
  0x4f   :  { %610 = vmatpush3.msra.mxu0 %v380_v17 }
  0x50   :  { %611 = vmatprep.subr.mxu0 %v741_v0 }
  0x51   :  { %612 = vmatpush3.msra.mxu0 %v379_v18 }
  0x52   :  { %613 = vmatprep.subr.mxu0 %v741_v0 }
  0x53   :  { %614 = vmatpush3.msra.mxu0 %v378_v19 }
  0x54   :  { %615 = vmatprep.subr.mxu0 %v741_v0 }
  0x55   :  { %616 = vmatpush3.msra.mxu0 %v377_v20 }
  0x56   :  { %617 = vmatprep.subr.mxu0 %v741_v0 }
  0x57   :  { %618 = vmatpush3.msra.mxu0 %v376_v21 }
  0x58   :  { %619 = vmatprep.subr.mxu0 %v741_v0 }
  0x59   :  { %620 = vmatpush3.msra.mxu0 %v375_v22 }
  0x5a   :  { %621 = vmatprep.subr.mxu0 %v741_v0 }
  0x5b   :  { %622 = vmatpush3.msra.mxu0 %v374_v23 }
  0x5c   :  { %623 = vmatprep.subr.mxu0 %v741_v0 }
  0x5d   :  { %624 = vmatpush3.msra.mxu0 %v373_v24 }
  0x5e   :  { %625 = vmatprep.subr.mxu0 %v741_v0 }
  0x5f   :  { %626 = vmatpush3.msra.mxu0 %v372_v25 }
  0x60   :  { %627 = vmatprep.subr.mxu0 %v741_v0 }
  0x61   :  { %628 = vmatpush3.msra.mxu0 %v371_v26 }
  0x62   :  { %629 = vmatprep.subr.mxu0 %v741_v0 }
  0x63   :  { %630 = vmatpush3.msra.mxu0 %v370_v27 }
  0x64   :  { %631 = vmatprep.subr.mxu0 %v741_v0 }
  0x65   :  { %632 = vmatpush3.msra.mxu0 %v369_v28 }
  0x66   :  { %633 = vmatprep.subr.mxu0 %v741_v0 }
  0x67   :  { %634 = vmatpush3.msra.mxu0 %v368_v29 }
 0x107   :  { %v177_v39 = vpop.f32.mrf.mxu0 }
 0x108   :  { %v178_v40 = vadd.f32 %v177_v39, %v109_v38 }
 0x109   :  { %v567_v41 = vpop.f32.mrf.mxu0 }
 0x10a   :  { %v181_v42 = vrot.slane %v178_v40, 4  ;;  %v328_v41 = vmul.f32 2.0, %v243_v30 }
 0x10c   :  { %v182_v43 = vadd.f32 %v181_v42, %v178_v40 }
 0x10e   :  { %v183_v44 = vrot.slane %v182_v43, 2 }
 0x110   :  { %v184_v45 = vadd.f32 %v183_v44, %v182_v43 }
 0x112   :  { %v185_v46 = vrot.slane %v184_v45, 1 }
 0x114   :  { %v186_v48 = vadd.f32 %v185_v46, %v184_v45 }
 0x116   :  { %v188_v49 = vsub.f32 %v186_v48, %v187_v47 }
 0x118   :  { %v189_v50 = vmul.f32 0.16666667, %v188_v49 }
 0x11a   :  { %v193_v51 = vrot.slane %v189_v50, %v855_v36  ;;  %v202_v56 = vsub.f32 %v102_v37, %v189_v50 }
 0x11c   :  { %v194_v52 = vsub.f32 %v178_v40, %v193_v51  ;;  %v203_v59 = vmul.f32 %v202_v56, %v202_v56 }
 0x11e   :  { %v195_v53 = vmul.f32 %v194_v52, %v194_v52  ;;  %v204_v62 = vmul.f32 2.0, %v203_v59 }
 0x120   :  { %v196_v54 = vrot.slane %v195_v53, 4 }
 0x122   :  { %v197_v55 = vadd.f32 %v196_v54, %v195_v53 }
 0x124   :  { %v198_v57 = vrot.slane %v197_v55, 2 }
 0x126   :  { %v199_v58 = vadd.f32 %v198_v57, %v197_v55 }
 0x128   :  { %v200_v60 = vrot.slane %v199_v58, 1 }
 0x12a   :  { %v201_v61 = vadd.f32 %v200_v60, %v199_v58  ;;  %v244_v60 = vld [vmem:[%s916_s9] sm:$0x1]  ;;  %s468_s9 = sshll.u32 %s743_s23, 4  ;;  %s469_s9 = int_to_ptr.vmem [resolvable:$true] %s468_s9 }
 0x12b   :  { %s710_s24 = scalar_lea.vmem %s469_s9, 128  ;;  %p715_p2 = scmp.lt.s32.totalorder %s469_s9, %s469_s9 }
 0x12c   :  { %v205_v63 = vsub.f32 %v201_v61, %v204_v62  ;;  %p711_p1 = scmp.ne.s32.totalorder %s469_s9, %s710_s24  ;;  %p716_p3 = scmp.lt.s32.totalorder %s710_s24, %s710_s24 }
 0x12e   :  { %v206_v1 = vmul.f32 0.16666667, %v205_v63  ;;  %p717_p4 = por %p716_p3, %p715_p2 }
 0x130   :  { %v207_v2 = vmax.f32 %v206_v1, 0.0  ;;  %v480_v1 = vld [vmem:[%s917_s10] ss:$0 sm:$0xff]  ;;  %p718_p5 = pnand %p717_p4, %p711_p1 }
 0x132   :  { %v208_v3 = vadd.f32 1e-05, %v207_v2 }
 0x134   :  { %646 = vrsqrt.f32 %v208_v3 }
 0x141   :  { %v647_v5 = vpop.eup %646 }
 0x142   :  { %v210_v6 = vmul.f32 %v647_v5, %v103_v4 }
 0x144   :  { %v215_v7 = vrot.slane %v210_v6, %v855_v36  ;;  %v481_v6 = vld [vmem:[%s913_s6] ss:$0 sm:$0xff] }
 0x146   :  { %v217_v9 = vmul.f32 %v215_v7, %v194_v52 }
 0x148   :  { %v224_v10 = vadd.f32 %v479_v8, %v217_v9 }
 0x14a   :  { %v225_v12 = vmax.f32 %v224_v10, 0.0 }
 0x14c   :  { %v226_v13 = vmul.f32 %v870_v11, %v225_v12 }
 0x14e   :  { %601 = vmatmul.mubr.f32.vlgmr.msra.gmra.mxu1 %v226_v13 }
 0x20e   :  { %v318_v32 = vpop.f32.mrf.mxu1 }
 0x20f   :  { %v319_v33 = vadd.f32 %v318_v32, %v250_v31 }
 0x210   :  { %v602_v34 = vpop.f32.mrf.mxu1 }
 0x211   :  { %v322_v35 = vrot.slane %v319_v33, 4 }
 0x213   :  { %v323_v37 = vadd.f32 %v322_v35, %v319_v33 }
 0x215   :  { %v324_v38 = vrot.slane %v323_v37, 2 }
 0x217   :  { %v325_v39 = vadd.f32 %v324_v38, %v323_v37 }
 0x219   :  { %v326_v40 = vrot.slane %v325_v39, 1 }
 0x21b   :  { %v327_v42 = vadd.f32 %v326_v40, %v325_v39 }
 0x21d   :  { %v329_v43 = vsub.f32 %v327_v42, %v328_v41 }
 0x21f   :  { %v330_v44 = vmul.f32 0.16666667, %v329_v43 }
 0x221   :  { %v334_v0 = vrot.slane %v330_v44, %v855_v36  ;;  %v343_v49 = vsub.f32 %v243_v30, %v330_v44 }
 0x223   :  { %v335_v45 = vsub.f32 %v319_v33, %v334_v0  ;;  %v344_v52 = vmul.f32 %v343_v49, %v343_v49 }
 0x225   :  { %v336_v46 = vmul.f32 %v335_v45, %v335_v45  ;;  %v345_v55 = vmul.f32 2.0, %v344_v52 }
 0x227   :  { %v337_v47 = vrot.slane %v336_v46, 4 }
 0x229   :  { %v338_v48 = vadd.f32 %v337_v47, %v336_v46 }
 0x22b   :  { %v339_v50 = vrot.slane %v338_v48, 2 }
 0x22d   :  { %v340_v51 = vadd.f32 %v339_v50, %v338_v48 }
 0x22f   :  { %v341_v53 = vrot.slane %v340_v51, 1 }
 0x231   :  { %v342_v54 = vadd.f32 %v341_v53, %v340_v51 }
 0x233   :  { %v346_v56 = vsub.f32 %v342_v54, %v345_v55 }
 0x235   :  { %v347_v57 = vmul.f32 0.16666667, %v346_v56 }
 0x237   :  { %v348_v58 = vmax.f32 %v347_v57, 0.0 }
 0x239   :  { %v349_v59 = vadd.f32 1e-05, %v348_v58 }
 0x23b   :  { %648 = vrsqrt.f32 %v349_v59 }
 0x248   :  { %v649_v61 = vpop.eup %648 }
 0x249   :  { %v351_v62 = vmul.f32 %v649_v61, %v244_v60 }
 0x24b   :  { %v356_v63 = vrot.slane %v351_v62, %v855_v36 }
 0x24d   :  { %v358_v2 = vmul.f32 %v356_v63, %v335_v45 }
 0x24f   :  { %v365_v3 = vadd.f32 %v480_v1, %v358_v2 }
 0x251   :  { %v366_v4 = vmax.f32 %v365_v3, 0.0 }
 0x253   :  { %v367_v5 = vmul.f32 %v870_v11, %v366_v4 }
 0x255   :  { %636 = vmatmul.mubr.f32.vlgmr.msra.gmra.mxu0 %v367_v5 }
 0x315   :  { %v457_v7 = vpop.f32.mrf.mxu0 }
 0x316   :  { %v458_v8 = vadd.f32 %v481_v6, %v457_v7 }
 0x317   :  { %v637_v36 = vpop.f32.mrf.mxu0 }
 0x318   :  { %461 = vst [vmem:[#allocation8] sm:$0xff] %v458_v8 }
 0x319   :  { %721 = shalt.err (!%p718_p5)
}
 0x31a   :  { %471 = dma.vmem_to_hbm [thread:$0]  %s469_s9, 128, %s918_s11, [#allocation4]  }
 0x31b   :  { %734 = dma.done.wait [#allocation4], 128  }
 0x31c   :  { %735 = vsyncadd [#allocation4], 4294967168 }
 0x31d   :  { %475 = vsyncpa [#allocation3], 1 }
 0x31e   :  { %476 = vsyncpa [#allocation6], 1 }
 0x31f   :  { %477 = vsyncpa [#allocation4], 1 }

</bundles_post_ra>
